<compile_context>
chip_gen: v7x
topology: tpu7x:2x2x1
jax: 0.10.0
libtpu: 0.0.40
codegen_flags: <defaults>
</compile_context>

<pallas_src>
import jax
import jax.numpy as jnp
from jax.experimental import pallas as pl
from jax.experimental.pallas import tpu as pltpu


OUTPUT_DIM2KEYS = {2: "vector", 3: "crossattn", 4: "concat", 5: "concat"}
KEY2CATDIM = {"vector": 1, "crossattn": 2, "concat": 1}


# ----------------------------------------------------------------------------
# Small helpers
# ----------------------------------------------------------------------------
def _cdiv(a, b):
    return -(-a // b)


def _itemsize(x):
    return jnp.dtype(x.dtype).itemsize


def _vmem_capacity_bytes():
    try:
        return int(pltpu.get_tpu_info().vmem_capacity_bytes)
    except Exception:
        return 64 << 20  # conservative default = v7x per-TensorCore VMEM


def _tables_fit_vmem(tables, tb, out_row_bytes):
    """True if (double-buffered) tables + output tiles fit a safe VMEM budget."""
    cap = _vmem_capacity_bytes()
    budget = int(cap * 0.35)  # headroom for pipeline buffers / compiler scratch
    need = 2 * sum(int(t.shape[0]) * int(t.shape[1]) * _itemsize(t) for t in tables)
    need += 2 * tb * out_row_bytes
    return need <= budget


# ----------------------------------------------------------------------------
# Fused, batched, VMEM-resident gather kernel (primary path)
# ----------------------------------------------------------------------------
def _fused_class_gather(cls_ids, vec_tables, cross_tables):
    """One pallas_call: batched embedding gather for all tables, concat fused.

    cls_ids:      (B,) integer class ids.
    vec_tables:   tables whose embedder output is (B, D)    -> 'vector'.
    cross_tables: tables whose embedder output is (B, 1, D) -> 'crossattn'.
    Returns {'vector': (B, sum Dv)} and/or {'crossattn': (B, 1, sum Dc)}.
    """
    vec_tables = list(vec_tables)
    cross_tables = list(cross_tables)
    tables = vec_tables + cross_tables
    assert tables, "at least one embedding table required"

    n_vec, n_cross = len(vec_tables), len(cross_tables)
    vec_dims = [int(t.shape[1]) for t in vec_tables]
    cross_dims = [int(t.shape[1]) for t in cross_tables]
    n_rows = [int(t.shape[0]) for t in tables]
    d_vec, d_cross = sum(vec_dims), sum(cross_dims)
    vdtype = vec_tables[0].dtype if n_vec else None
    cdtype = cross_tables[0].dtype if n_cross else None

    batch = int(cls_ids.shape[0])
    max_item = max(_itemsize(t) for t in tables)
    tb = 16 if max_item <= 2 else 8              # full sublane packing per dtype
    if tb > 8 and _cdiv(batch, tb) < 2 <= _cdiv(batch, 8):
        tb = 8                                   # keep >=2 grid steps (v7x: 2 TCs)
    b_pad = tb * max(1, _cdiv(batch, tb))

    ids = cls_ids.astype(jnp.int32)
    if b_pad != batch:
        ids = jnp.pad(ids, (0, b_pad - batch))   # pad rows are sliced off below

    out_row_bytes = (d_vec * _itemsize(vec_tables[0]) if n_vec else 0) + \
                    (d_cross * _itemsize(cross_tables[0]) if n_cross else 0)
    table_bytes = sum(int(t.shape[0]) * int(t.shape[1]) * _itemsize(t) for t in tables)

    def kernel(ids_ref, *refs):
        tabs = refs[:n_vec + n_cross]            # each (n_classes_t, 1, d_t) in VMEM
        outs = refs[n_vec + n_cross:]
        base = pl.program_id(0) * tb
        # Class ids live in SMEM (scalar prefetch).  Clamp on the scalar unit so
        # a bad id can never become an OOB VMEM read.  NOTE: nn.Embedding would
        # raise on an OOB id; here it deterministically maps to the last class.
        cids = [ids_ref[base + r] for r in range(tb)]

        def gather_tile(tab, rows_in_tab):
            rows = [tab[jnp.clip(cids[r], 0, rows_in_tab - 1)] for r in range(tb)]
            return jnp.concatenate(rows, axis=0)          # (tb, d): sublane-dense

        oi = 0
        if n_vec:
            vec_out = outs[oi]; oi += 1
            off = 0
            for t in range(n_vec):
                vec_out[:, off:off + vec_dims[t]] = gather_tile(tabs[t], n_rows[t])
                off += vec_dims[t]
        if n_cross:
            cross_out = outs[oi]
            off = 0
            for t in range(n_cross):
                cross_out[:, off:off + cross_dims[t]] = gather_tile(
                    tabs[n_vec + t], n_rows[n_vec + t])
                off += cross_dims[t]

    # Whole-table-resident in_specs: constant block index -> fetched exactly once.
    in_specs = [
        pl.BlockSpec((int(t.shape[0]), 1, int(t.shape[1])),
                     lambda i, ids_ref: (0, 0, 0))
        for t in tables
    ]
    out_shapes, out_specs = [], []
    if n_vec:
        out_shapes.append(jax.ShapeDtypeStruct((b_pad, d_vec), vdtype))
        out_specs.append(pl.BlockSpec((tb, d_vec), lambda i, ids_ref: (i, 0)))
    if n_cross:
        out_shapes.append(jax.ShapeDtypeStruct((b_pad, d_cross), cdtype))
        out_specs.append(pl.BlockSpec((tb, d_cross), lambda i, ids_ref: (i, 0)))

    cap = _vmem_capacity_bytes()
    need_bytes = 2 * table_bytes + 2 * tb * out_row_bytes + (1 << 20)
    vmem_limit = int(min(0.9 * cap, max(4 * need_bytes, 32 << 20)))
    cost = pl.CostEstimate(
        flops=0, transcendentals=0,
        bytes_accessed=b_pad * 4 + table_bytes + b_pad * out_row_bytes)

    results = pl.pallas_call(
        kernel,
        out_shape=tuple(out_shapes),
        grid_spec=pltpu.PrefetchScalarGridSpec(
            num_scalar_prefetch=1,               # ids -> SMEM, read on scalar unit
            grid=(b_pad // tb,),
            in_specs=in_specs,
            out_specs=out_specs,
        ),
        compiler_params=pltpu.CompilerParams(
            dimension_semantics=("parallel",),
            vmem_limit_bytes=vmem_limit,
        ),
        cost_estimate=cost,
    )(ids, *[t.reshape(int(t.shape[0]), 1, int(t.shape[1])) for t in tables])

    out = {}
    oi = 0
    if n_vec:
        v = results[oi]; oi += 1
        out["vector"] = v[:batch] if b_pad != batch else v
    if n_cross:
        c = results[oi]
        if b_pad != batch:
            c = c[:batch]
        out["crossattn"] = c.reshape(batch, 1, d_cross)   # free reshape in wrapper
    return out


# ----------------------------------------------------------------------------
# Large-table fallback: per-row scalar-prefetch block gather straight from HBM
# ----------------------------------------------------------------------------
def _gather_row_kernel(ids_ref, table_ref, out_ref):
    """Copy the table row selected (via the BlockSpec index_map) for this step."""
    del ids_ref
    out_ref[...] = table_ref[...]


def class_embedder_forward(c, embedding_table, add_sequence_dim=False, *,
                           force_row_gather=False):
    """ClassEmbedder.forward: (B,) ids -> (B, D) ['vector'] or (B, 1, D) ['crossattn']."""
    n_classes, embed_dim = (int(s) for s in embedding_table.shape)
    itemsize = _itemsize(embedding_table)

    # Fast path: table fits VMEM -> batched in-kernel gather (shared with fusion).
    if not force_row_gather and _tables_fit_vmem([embedding_table], 16,
                                                 embed_dim * itemsize):
        if add_sequence_dim:
            return _fused_class_gather(c, [], [embedding_table])["crossattn"]
        return _fused_class_gather(c, [embedding_table], [])["vector"]

    # Fallback for huge tables: only B*D*itemsize bytes of table move, regardless
    # of table size.  The id IS the DMA block index, so clamp before the kernel
    # (nn.Embedding would raise on an OOB id; here it maps to the last class).
    batch = int(c.shape[0])
    ids = jnp.clip(c.astype(jnp.int32), 0, n_classes - 1)
    table3d = embedding_table.reshape(n_classes, 1, embed_dim)

    cap = _vmem_capacity_bytes()
    cost = pl.CostEstimate(flops=0, transcendentals=0,
                           bytes_accessed=batch * (4 + 2 * embed_dim * itemsize))

    out = pl.pallas_call(
        _gather_row_kernel,
        out_shape=jax.ShapeDtypeStruct((batch, 1, embed_dim), embedding_table.dtype),
        grid_spec=pltpu.PrefetchScalarGridSpec(
            num_scalar_prefetch=1,               # ids -> SMEM
            grid=(batch,),
            in_specs=[
                # Block index along the class axis is the prefetched id itself.
                # 3-deep pipeline: per-row fetches are latency-, not bandwidth-,
                # bound, so keep more of them in flight.
                pl.BlockSpec((1, 1, embed_dim),
                             lambda i, ids_ref: (ids_ref[i], 0, 0),
                             pipeline_mode=pl.Buffered(3)),
            ],
            out_specs=pl.BlockSpec((1, 1, embed_dim),
                                   lambda i, ids_ref: (i, 0, 0)),
        ),
        compiler_params=pltpu.CompilerParams(
            dimension_semantics=("parallel",),
            vmem_limit_bytes=int(min(0.9 * cap, 32 << 20)),
        ),
        cost_estimate=cost,
    )(ids, table3d)

    if add_sequence_dim:
        return out                # (B, 1, D) -> ndim 3 -> 'crossattn'
    return out[:, 0, :]           # (B, D)    -> ndim 2 -> 'vector'


# ----------------------------------------------------------------------------
# Conditioner glue (dict routing + concat), mirroring the PyTorch module
# ----------------------------------------------------------------------------
class ClassEmbedder:
    """JAX analogue of a ClassEmbedder AbstractEmbModel (inference forward)."""

    def __init__(self, embedding_table, add_sequence_dim=False,
                 input_keys=("cls",), is_trainable=False):
        self.embedding_table = embedding_table
        self.add_sequence_dim = add_sequence_dim
        self.input_keys = tuple(input_keys)
        self.is_trainable = is_trainable

    def __call__(self, c):
        return class_embedder_forward(c, self.embedding_table, self.add_sequence_dim)


def _can_fuse(embedders):
    if not embedders:
        return False
    if not all(isinstance(e, ClassEmbedder) for e in embedders):
        return False
    keys = {e.input_keys for e in embedders}
    if len(keys) != 1 or len(next(iter(keys))) != 1:
        return False
    vec = [e.embedding_table for e in embedders if not e.add_sequence_dim]
    cro = [e.embedding_table for e in embedders if e.add_sequence_dim]
    for grp in (vec, cro):
        if grp and len({str(t.dtype) for t in grp}) != 1:
            return False          # in-kernel concat needs one dtype per group
    out_row_bytes = sum(int(t.shape[1]) * _itemsize(t) for t in vec + cro)
    return _tables_fit_vmem(vec + cro, 16, out_row_bytes)


def conditioner_forward(cond, embedders, allow_fusion=True):
    """Conditioner.forward.  cond: dict of inputs; embedders: list of embedders."""
    embedders = list(embedders)

    # Fused fast path: every embedder is a ClassEmbedder over the same ids and
    # all tables fit VMEM -> one pallas_call writes pre-concatenated outputs.
    if allow_fusion and _can_fuse(embedders):
        ids = cond[embedders[0].input_keys[0]]
        vec_tables = [e.embedding_table for e in embedders if not e.add_sequence_dim]
        cross_tables = [e.embedding_table for e in embedders if e.add_sequence_dim]
        return _fused_class_gather(ids, vec_tables, cross_tables)

    # Generic path: mirrors the PyTorch loop (per-embedder forward + concat).
    output = {}
    for embedder in embedders:
        emb_out = embedder(*[cond[k] for k in embedder.input_keys])
        if not isinstance(emb_out, (list, tuple)):
            emb_out = [emb_out]
        for emb in emb_out:
            out_key = OUTPUT_DIM2KEYS[emb.ndim]
            if out_key in output:
                output[out_key] = jnp.concatenate(
                    (output[out_key], emb), axis=KEY2CATDIM[out_key])
            else:
                output[out_key] = emb
    return output


# TODO(synk): torch.no_grad() / is_trainable / disabled_train bookkeeping is
# training-infra control flow with no Pallas equivalent; inference forward only.


if __name__ == "__main__":
    n_classes, embed_dim, batch = 32, 128, 16   # small but sublane/lane aligned

    key = jax.random.PRNGKey(0)
    k1, k2, k3, kids = jax.random.split(key, 4)
    # nn.Embedding default init: N(0, 1)
    table_vec_a = jax.random.normal(k1, (n_classes, embed_dim), dtype=jnp.float32)
    table_vec_b = jax.random.normal(k2, (n_classes, embed_dim), dtype=jnp.float32)
    table_seq = jax.random.normal(k3, (n_classes, embed_dim), dtype=jnp.float32)
    cls_ids = jax.random.randint(kids, (batch,), 0, n_classes, dtype=jnp.int32)

    embedders = [
        ClassEmbedder(table_vec_a, add_sequence_dim=False, input_keys=("cls",)),
        ClassEmbedder(table_vec_b, add_sequence_dim=False, input_keys=("cls",)),
        ClassEmbedder(table_seq, add_sequence_dim=True, input_keys=("cls",)),
    ]

    # Pure-JAX reference (gather + Conditioner routing/concat semantics)
    ref_vector = jnp.concatenate(
        (jnp.take(table_vec_a, cls_ids, axis=0),
         jnp.take(table_vec_b, cls_ids, axis=0)), axis=KEY2CATDIM["vector"])
    ref_cross = jnp.take(table_seq, cls_ids, axis=0)[:, None, :]

    # 1) Fused path: one pallas_call, batched gather, in-kernel concat.
    out = jax.block_until_ready(conditioner_forward({"cls": cls_ids}, embedders))
    assert set(out.keys()) == {"vector", "crossattn"}, out.keys()
    assert out["vector"].shape == ref_vector.shape
    assert out["crossattn"].shape == ref_cross.shape
    assert jnp.allclose(out["vector"], ref_vector), "fused vector mismatch"
    assert jnp.allclose(out["crossattn"], ref_cross), "fused crossattn mismatch"

    # 2) Unfused path (mirrors the PyTorch per-embedder loop + host concat).
    out_uf = jax.block_until_ready(
        conditioner_forward({"cls": cls_ids}, embedders, allow_fusion=False))
    assert jnp.allclose(out_uf["vector"], ref_vector), "unfused vector mismatch"
    assert jnp.allclose(out_uf["crossattn"], ref_cross), "unfused crossattn mismatch"

    # 3) Ragged batch (exercises the pad-to-TB + slice path).
    rb = 13
    out_r = jax.block_until_ready(
        conditioner_forward({"cls": cls_ids[:rb]}, embedders))
    assert jnp.allclose(out_r["vector"], ref_vector[:rb]), "ragged vector mismatch"
    assert jnp.allclose(out_r["crossattn"], ref_cross[:rb]), "ragged crossattn mismatch"

    # 4) Large-table fallback kernel (per-row HBM block gather), forced for coverage.
    fb = jax.block_until_ready(
        class_embedder_forward(cls_ids, table_vec_a, force_row_gather=True))
    assert jnp.allclose(fb, jnp.take(table_vec_a, cls_ids, axis=0)), "fallback mismatch"

    print("KERNEL_OK")
</pallas_src>

<mosaic_0001>
module attributes {stable_mosaic.version = 11 : i64} {
  func.func @kernel(%arg0: i32, %arg1: memref<16xi32, #tpu.memory_space<smem>>, %arg2: memref<32x1x128xf32, #tpu.memory_space<vmem>>, %arg3: memref<32x1x128xf32, #tpu.memory_space<vmem>>, %arg4: memref<32x1x128xf32, #tpu.memory_space<vmem>>, %arg5: memref<8x256xf32, #tpu.memory_space<vmem>>, %arg6: memref<8x128xf32, #tpu.memory_space<vmem>>) attributes {dimension_semantics = [#tpu.dimension_semantics<parallel>], iteration_bounds = array<i64: 2>, scalar_prefetch = 1 : i64, scratch_operands = 0 : i64, tpu.core_type = #tpu.core_type<tc>, window_params = [{pipeline_mode = #tpu.pipeline_mode<synchronous>, transform_indices = @transform_0, window_bounds = array<i64: 32, 1, 128>}, {pipeline_mode = #tpu.pipeline_mode<synchronous>, transform_indices = @transform_1, window_bounds = array<i64: 32, 1, 128>}, {pipeline_mode = #tpu.pipeline_mode<synchronous>, transform_indices = @transform_2, window_bounds = array<i64: 32, 1, 128>}, {transform_indices = @transform_3, window_bounds = array<i64: 8, 256>}, {transform_indices = @transform_4, window_bounds = array<i64: 8, 128>}]} {
    %c8_i32 = arith.constant 8 : i32
    %0 = arith.muli %arg0, %c8_i32 : i32
    %c0_i32 = arith.constant 0 : i32
    %1 = arith.addi %0, %c0_i32 : i32
    %2 = arith.index_cast %1 : i32 to index
    %3 = memref.load %arg1[%2] : memref<16xi32, #tpu.memory_space<smem>>
    %c1_i32 = arith.constant 1 : i32
    %4 = arith.addi %0, %c1_i32 : i32
    %5 = arith.index_cast %4 : i32 to index
    %6 = memref.load %arg1[%5] : memref<16xi32, #tpu.memory_space<smem>>
    %c2_i32 = arith.constant 2 : i32
    %7 = arith.addi %0, %c2_i32 : i32
    %8 = arith.index_cast %7 : i32 to index
    %9 = memref.load %arg1[%8] : memref<16xi32, #tpu.memory_space<smem>>
    %c3_i32 = arith.constant 3 : i32
    %10 = arith.addi %0, %c3_i32 : i32
    %11 = arith.index_cast %10 : i32 to index
    %12 = memref.load %arg1[%11] : memref<16xi32, #tpu.memory_space<smem>>
    %c4_i32 = arith.constant 4 : i32
    %13 = arith.addi %0, %c4_i32 : i32
    %14 = arith.index_cast %13 : i32 to index
    %15 = memref.load %arg1[%14] : memref<16xi32, #tpu.memory_space<smem>>
    %c5_i32 = arith.constant 5 : i32
    %16 = arith.addi %0, %c5_i32 : i32
    %17 = arith.index_cast %16 : i32 to index
    %18 = memref.load %arg1[%17] : memref<16xi32, #tpu.memory_space<smem>>
    %c6_i32 = arith.constant 6 : i32
    %19 = arith.addi %0, %c6_i32 : i32
    %20 = arith.index_cast %19 : i32 to index
    %21 = memref.load %arg1[%20] : memref<16xi32, #tpu.memory_space<smem>>
    %c7_i32 = arith.constant 7 : i32
    %22 = arith.addi %0, %c7_i32 : i32
    %23 = arith.index_cast %22 : i32 to index
    %24 = memref.load %arg1[%23] : memref<16xi32, #tpu.memory_space<smem>>
    %c0_i32_0 = arith.constant 0 : i32
    %c31_i32 = arith.constant 31 : i32
    %25 = arith.maxsi %c0_i32_0, %3 : i32
    %26 = arith.minsi %c31_i32, %25 : i32
    %27 = arith.index_cast %26 : i32 to index
    %c0 = arith.constant 0 : index
    %c0_1 = arith.constant 0 : index
    %28 = vector.load %arg2[%27, %c0, %c0_1] : memref<32x1x128xf32, #tpu.memory_space<vmem>>, vector<1x1x128xf32>
    %29 = vector.shape_cast %28 : vector<1x1x128xf32> to vector<1x128xf32>
    %c0_i32_2 = arith.constant 0 : i32
    %c31_i32_3 = arith.constant 31 : i32
    %30 = arith.maxsi %c0_i32_2, %6 : i32
    %31 = arith.minsi %c31_i32_3, %30 : i32
    %32 = arith.index_cast %31 : i32 to index
    %c0_4 = arith.constant 0 : index
    %c0_5 = arith.constant 0 : index
    %33 = vector.load %arg2[%32, %c0_4, %c0_5] : memref<32x1x128xf32, #tpu.memory_space<vmem>>, vector<1x1x128xf32>
    %34 = vector.shape_cast %33 : vector<1x1x128xf32> to vector<1x128xf32>
    %c0_i32_6 = arith.constant 0 : i32
    %c31_i32_7 = arith.constant 31 : i32
    %35 = arith.maxsi %c0_i32_6, %9 : i32
    %36 = arith.minsi %c31_i32_7, %35 : i32
    %37 = arith.index_cast %36 : i32 to index
    %c0_8 = arith.constant 0 : index
    %c0_9 = arith.constant 0 : index
    %38 = vector.load %arg2[%37, %c0_8, %c0_9] : memref<32x1x128xf32, #tpu.memory_space<vmem>>, vector<1x1x128xf32>
    %39 = vector.shape_cast %38 : vector<1x1x128xf32> to vector<1x128xf32>
    %c0_i32_10 = arith.constant 0 : i32
    %c31_i32_11 = arith.constant 31 : i32
    %40 = arith.maxsi %c0_i32_10, %12 : i32
    %41 = arith.minsi %c31_i32_11, %40 : i32
    %42 = arith.index_cast %41 : i32 to index
    %c0_12 = arith.constant 0 : index
    %c0_13 = arith.constant 0 : index
    %43 = vector.load %arg2[%42, %c0_12, %c0_13] : memref<32x1x128xf32, #tpu.memory_space<vmem>>, vector<1x1x128xf32>
    %44 = vector.shape_cast %43 : vector<1x1x128xf32> to vector<1x128xf32>
    %c0_i32_14 = arith.constant 0 : i32
    %c31_i32_15 = arith.constant 31 : i32
    %45 = arith.maxsi %c0_i32_14, %15 : i32
    %46 = arith.minsi %c31_i32_15, %45 : i32
    %47 = arith.index_cast %46 : i32 to index
    %c0_16 = arith.constant 0 : index
    %c0_17 = arith.constant 0 : index
    %48 = vector.load %arg2[%47, %c0_16, %c0_17] : memref<32x1x128xf32, #tpu.memory_space<vmem>>, vector<1x1x128xf32>
    %49 = vector.shape_cast %48 : vector<1x1x128xf32> to vector<1x128xf32>
    %c0_i32_18 = arith.constant 0 : i32
    %c31_i32_19 = arith.constant 31 : i32
    %50 = arith.maxsi %c0_i32_18, %18 : i32
    %51 = arith.minsi %c31_i32_19, %50 : i32
    %52 = arith.index_cast %51 : i32 to index
    %c0_20 = arith.constant 0 : index
    %c0_21 = arith.constant 0 : index
    %53 = vector.load %arg2[%52, %c0_20, %c0_21] : memref<32x1x128xf32, #tpu.memory_space<vmem>>, vector<1x1x128xf32>
    %54 = vector.shape_cast %53 : vector<1x1x128xf32> to vector<1x128xf32>
    %c0_i32_22 = arith.constant 0 : i32
    %c31_i32_23 = arith.constant 31 : i32
    %55 = arith.maxsi %c0_i32_22, %21 : i32
    %56 = arith.minsi %c31_i32_23, %55 : i32
    %57 = arith.index_cast %56 : i32 to index
    %c0_24 = arith.constant 0 : index
    %c0_25 = arith.constant 0 : index
    %58 = vector.load %arg2[%57, %c0_24, %c0_25] : memref<32x1x128xf32, #tpu.memory_space<vmem>>, vector<1x1x128xf32>
    %59 = vector.shape_cast %58 : vector<1x1x128xf32> to vector<1x128xf32>
    %c0_i32_26 = arith.constant 0 : i32
    %c31_i32_27 = arith.constant 31 : i32
    %60 = arith.maxsi %c0_i32_26, %24 : i32
    %61 = arith.minsi %c31_i32_27, %60 : i32
    %62 = arith.index_cast %61 : i32 to index
    %c0_28 = arith.constant 0 : index
    %c0_29 = arith.constant 0 : index
    %63 = vector.load %arg2[%62, %c0_28, %c0_29] : memref<32x1x128xf32, #tpu.memory_space<vmem>>, vector<1x1x128xf32>
    %64 = vector.shape_cast %63 : vector<1x1x128xf32> to vector<1x128xf32>
    %65 = tpu.concatenate %29, %34, %39, %44, %49, %54, %59, %64 in 0 : vector<1x128xf32>, vector<1x128xf32>, vector<1x128xf32>, vector<1x128xf32>, vector<1x128xf32>, vector<1x128xf32>, vector<1x128xf32>, vector<1x128xf32> -> vector<8x128xf32>
    %c0_30 = arith.constant 0 : index
    %c0_31 = arith.constant 0 : index
    %66 = vector.load %arg5[%c0_30, %c0_31] : memref<8x256xf32, #tpu.memory_space<vmem>>, vector<8x128xf32>
    tpu.vector_store %arg5[%c0_30, %c0_31], %65 {strides = array<i32>} : memref<8x256xf32, #tpu.memory_space<vmem>>, vector<8x128xf32>,
    %c0_i32_32 = arith.constant 0 : i32
    %c31_i32_33 = arith.constant 31 : i32
    %67 = arith.maxsi %c0_i32_32, %3 : i32
    %68 = arith.minsi %c31_i32_33, %67 : i32
    %69 = arith.index_cast %68 : i32 to index
    %c0_34 = arith.constant 0 : index
    %c0_35 = arith.constant 0 : index
    %70 = vector.load %arg3[%69, %c0_34, %c0_35] : memref<32x1x128xf32, #tpu.memory_space<vmem>>, vector<1x1x128xf32>
    %71 = vector.shape_cast %70 : vector<1x1x128xf32> to vector<1x128xf32>
    %c0_i32_36 = arith.constant 0 : i32
    %c31_i32_37 = arith.constant 31 : i32
    %72 = arith.maxsi %c0_i32_36, %6 : i32
    %73 = arith.minsi %c31_i32_37, %72 : i32
    %74 = arith.index_cast %73 : i32 to index
    %c0_38 = arith.constant 0 : index
    %c0_39 = arith.constant 0 : index
    %75 = vector.load %arg3[%74, %c0_38, %c0_39] : memref<32x1x128xf32, #tpu.memory_space<vmem>>, vector<1x1x128xf32>
    %76 = vector.shape_cast %75 : vector<1x1x128xf32> to vector<1x128xf32>
    %c0_i32_40 = arith.constant 0 : i32
    %c31_i32_41 = arith.constant 31 : i32
    %77 = arith.maxsi %c0_i32_40, %9 : i32
    %78 = arith.minsi %c31_i32_41, %77 : i32
    %79 = arith.index_cast %78 : i32 to index
    %c0_42 = arith.constant 0 : index
    %c0_43 = arith.constant 0 : index
    %80 = vector.load %arg3[%79, %c0_42, %c0_43] : memref<32x1x128xf32, #tpu.memory_space<vmem>>, vector<1x1x128xf32>
    %81 = vector.shape_cast %80 : vector<1x1x128xf32> to vector<1x128xf32>
    %c0_i32_44 = arith.constant 0 : i32
    %c31_i32_45 = arith.constant 31 : i32
    %82 = arith.maxsi %c0_i32_44, %12 : i32
    %83 = arith.minsi %c31_i32_45, %82 : i32
    %84 = arith.index_cast %83 : i32 to index
    %c0_46 = arith.constant 0 : index
    %c0_47 = arith.constant 0 : index
    %85 = vector.load %arg3[%84, %c0_46, %c0_47] : memref<32x1x128xf32, #tpu.memory_space<vmem>>, vector<1x1x128xf32>
    %86 = vector.shape_cast %85 : vector<1x1x128xf32> to vector<1x128xf32>
    %c0_i32_48 = arith.constant 0 : i32
    %c31_i32_49 = arith.constant 31 : i32
    %87 = arith.maxsi %c0_i32_48, %15 : i32
    %88 = arith.minsi %c31_i32_49, %87 : i32
    %89 = arith.index_cast %88 : i32 to index
    %c0_50 = arith.constant 0 : index
    %c0_51 = arith.constant 0 : index
    %90 = vector.load %arg3[%89, %c0_50, %c0_51] : memref<32x1x128xf32, #tpu.memory_space<vmem>>, vector<1x1x128xf32>
    %91 = vector.shape_cast %90 : vector<1x1x128xf32> to vector<1x128xf32>
    %c0_i32_52 = arith.constant 0 : i32
    %c31_i32_53 = arith.constant 31 : i32
    %92 = arith.maxsi %c0_i32_52, %18 : i32
    %93 = arith.minsi %c31_i32_53, %92 : i32
    %94 = arith.index_cast %93 : i32 to index
    %c0_54 = arith.constant 0 : index
    %c0_55 = arith.constant 0 : index
    %95 = vector.load %arg3[%94, %c0_54, %c0_55] : memref<32x1x128xf32, #tpu.memory_space<vmem>>, vector<1x1x128xf32>
    %96 = vector.shape_cast %95 : vector<1x1x128xf32> to vector<1x128xf32>
    %c0_i32_56 = arith.constant 0 : i32
    %c31_i32_57 = arith.constant 31 : i32
    %97 = arith.maxsi %c0_i32_56, %21 : i32
    %98 = arith.minsi %c31_i32_57, %97 : i32
    %99 = arith.index_cast %98 : i32 to index
    %c0_58 = arith.constant 0 : index
    %c0_59 = arith.constant 0 : index
    %100 = vector.load %arg3[%99, %c0_58, %c0_59] : memref<32x1x128xf32, #tpu.memory_space<vmem>>, vector<1x1x128xf32>
    %101 = vector.shape_cast %100 : vector<1x1x128xf32> to vector<1x128xf32>
    %c0_i32_60 = arith.constant 0 : i32
    %c31_i32_61 = arith.constant 31 : i32
    %102 = arith.maxsi %c0_i32_60, %24 : i32
    %103 = arith.minsi %c31_i32_61, %102 : i32
    %104 = arith.index_cast %103 : i32 to index
    %c0_62 = arith.constant 0 : index
    %c0_63 = arith.constant 0 : index
    %105 = vector.load %arg3[%104, %c0_62, %c0_63] : memref<32x1x128xf32, #tpu.memory_space<vmem>>, vector<1x1x128xf32>
    %106 = vector.shape_cast %105 : vector<1x1x128xf32> to vector<1x128xf32>
    %107 = tpu.concatenate %71, %76, %81, %86, %91, %96, %101, %106 in 0 : vector<1x128xf32>, vector<1x128xf32>, vector<1x128xf32>, vector<1x128xf32>, vector<1x128xf32>, vector<1x128xf32>, vector<1x128xf32>, vector<1x128xf32> -> vector<8x128xf32>
    %c0_64 = arith.constant 0 : index
    %c128 = arith.constant 128 : index
    %108 = vector.load %arg5[%c0_64, %c128] : memref<8x256xf32, #tpu.memory_space<vmem>>, vector<8x128xf32>
    tpu.vector_store %arg5[%c0_64, %c128], %107 {strides = array<i32>} : memref<8x256xf32, #tpu.memory_space<vmem>>, vector<8x128xf32>,
    %c0_i32_65 = arith.constant 0 : i32
    %c31_i32_66 = arith.constant 31 : i32
    %109 = arith.maxsi %c0_i32_65, %3 : i32
    %110 = arith.minsi %c31_i32_66, %109 : i32
    %111 = arith.index_cast %110 : i32 to index
    %c0_67 = arith.constant 0 : index
    %c0_68 = arith.constant 0 : index
    %112 = vector.load %arg4[%111, %c0_67, %c0_68] : memref<32x1x128xf32, #tpu.memory_space<vmem>>, vector<1x1x128xf32>
    %113 = vector.shape_cast %112 : vector<1x1x128xf32> to vector<1x128xf32>
    %c0_i32_69 = arith.constant 0 : i32
    %c31_i32_70 = arith.constant 31 : i32
    %114 = arith.maxsi %c0_i32_69, %6 : i32
    %115 = arith.minsi %c31_i32_70, %114 : i32
    %116 = arith.index_cast %115 : i32 to index
    %c0_71 = arith.constant 0 : index
    %c0_72 = arith.constant 0 : index
    %117 = vector.load %arg4[%116, %c0_71, %c0_72] : memref<32x1x128xf32, #tpu.memory_space<vmem>>, vector<1x1x128xf32>
    %118 = vector.shape_cast %117 : vector<1x1x128xf32> to vector<1x128xf32>
    %c0_i32_73 = arith.constant 0 : i32
    %c31_i32_74 = arith.constant 31 : i32
    %119 = arith.maxsi %c0_i32_73, %9 : i32
    %120 = arith.minsi %c31_i32_74, %119 : i32
    %121 = arith.index_cast %120 : i32 to index
    %c0_75 = arith.constant 0 : index
    %c0_76 = arith.constant 0 : index
    %122 = vector.load %arg4[%121, %c0_75, %c0_76] : memref<32x1x128xf32, #tpu.memory_space<vmem>>, vector<1x1x128xf32>
    %123 = vector.shape_cast %122 : vector<1x1x128xf32> to vector<1x128xf32>
    %c0_i32_77 = arith.constant 0 : i32
    %c31_i32_78 = arith.constant 31 : i32
    %124 = arith.maxsi %c0_i32_77, %12 : i32
    %125 = arith.minsi %c31_i32_78, %124 : i32
    %126 = arith.index_cast %125 : i32 to index
    %c0_79 = arith.constant 0 : index
    %c0_80 = arith.constant 0 : index
    %127 = vector.load %arg4[%126, %c0_79, %c0_80] : memref<32x1x128xf32, #tpu.memory_space<vmem>>, vector<1x1x128xf32>
    %128 = vector.shape_cast %127 : vector<1x1x128xf32> to vector<1x128xf32>
    %c0_i32_81 = arith.constant 0 : i32
    %c31_i32_82 = arith.constant 31 : i32
    %129 = arith.maxsi %c0_i32_81, %15 : i32
    %130 = arith.minsi %c31_i32_82, %129 : i32
    %131 = arith.index_cast %130 : i32 to index
    %c0_83 = arith.constant 0 : index
    %c0_84 = arith.constant 0 : index
    %132 = vector.load %arg4[%131, %c0_83, %c0_84] : memref<32x1x128xf32, #tpu.memory_space<vmem>>, vector<1x1x128xf32>
    %133 = vector.shape_cast %132 : vector<1x1x128xf32> to vector<1x128xf32>
    %c0_i32_85 = arith.constant 0 : i32
    %c31_i32_86 = arith.constant 31 : i32
    %134 = arith.maxsi %c0_i32_85, %18 : i32
    %135 = arith.minsi %c31_i32_86, %134 : i32
    %136 = arith.index_cast %135 : i32 to index
    %c0_87 = arith.constant 0 : index
    %c0_88 = arith.constant 0 : index
    %137 = vector.load %arg4[%136, %c0_87, %c0_88] : memref<32x1x128xf32, #tpu.memory_space<vmem>>, vector<1x1x128xf32>
    %138 = vector.shape_cast %137 : vector<1x1x128xf32> to vector<1x128xf32>
    %c0_i32_89 = arith.constant 0 : i32
    %c31_i32_90 = arith.constant 31 : i32
    %139 = arith.maxsi %c0_i32_89, %21 : i32
    %140 = arith.minsi %c31_i32_90, %139 : i32
    %141 = arith.index_cast %140 : i32 to index
    %c0_91 = arith.constant 0 : index
    %c0_92 = arith.constant 0 : index
    %142 = vector.load %arg4[%141, %c0_91, %c0_92] : memref<32x1x128xf32, #tpu.memory_space<vmem>>, vector<1x1x128xf32>
    %143 = vector.shape_cast %142 : vector<1x1x128xf32> to vector<1x128xf32>
    %c0_i32_93 = arith.constant 0 : i32
    %c31_i32_94 = arith.constant 31 : i32
    %144 = arith.maxsi %c0_i32_93, %24 : i32
    %145 = arith.minsi %c31_i32_94, %144 : i32
    %146 = arith.index_cast %145 : i32 to index
    %c0_95 = arith.constant 0 : index
    %c0_96 = arith.constant 0 : index
    %147 = vector.load %arg4[%146, %c0_95, %c0_96] : memref<32x1x128xf32, #tpu.memory_space<vmem>>, vector<1x1x128xf32>
    %148 = vector.shape_cast %147 : vector<1x1x128xf32> to vector<1x128xf32>
    %149 = tpu.concatenate %113, %118, %123, %128, %133, %138, %143, %148 in 0 : vector<1x128xf32>, vector<1x128xf32>, vector<1x128xf32>, vector<1x128xf32>, vector<1x128xf32>, vector<1x128xf32>, vector<1x128xf32>, vector<1x128xf32> -> vector<8x128xf32>
    %c0_97 = arith.constant 0 : index
    %c0_98 = arith.constant 0 : index
    %150 = vector.load %arg6[%c0_97, %c0_98] : memref<8x128xf32, #tpu.memory_space<vmem>>, vector<8x128xf32>
    tpu.vector_store %arg6[%c0_97, %c0_98], %149 {strides = array<i32>} : memref<8x128xf32, #tpu.memory_space<vmem>>, vector<8x128xf32>,
    return
  }
  func.func @transform_0(%arg0: i32, %arg1: memref<16xi32, #tpu.memory_space<smem>>) -> (i32, i32, i32) {
    %c0_i32 = arith.constant 0 : i32
    %c0_i32_0 = arith.constant 0 : i32
    %c0_i32_1 = arith.constant 0 : i32
    %c0_i32_2 = arith.constant 0 : i32
    return %c0_i32, %c0_i32_0, %c0_i32_1 : i32, i32, i32
  }
  func.func @transform_1(%arg0: i32, %arg1: memref<16xi32, #tpu.memory_space<smem>>) -> (i32, i32, i32) {
    %c0_i32 = arith.constant 0 : i32
    %c0_i32_0 = arith.constant 0 : i32
    %c0_i32_1 = arith.constant 0 : i32
    %c0_i32_2 = arith.constant 0 : i32
    return %c0_i32, %c0_i32_0, %c0_i32_1 : i32, i32, i32
  }
  func.func @transform_2(%arg0: i32, %arg1: memref<16xi32, #tpu.memory_space<smem>>) -> (i32, i32, i32) {
    %c0_i32 = arith.constant 0 : i32
    %c0_i32_0 = arith.constant 0 : i32
    %c0_i32_1 = arith.constant 0 : i32
    %c0_i32_2 = arith.constant 0 : i32
    return %c0_i32, %c0_i32_0, %c0_i32_1 : i32, i32, i32
  }
  func.func @transform_3(%arg0: i32, %arg1: memref<16xi32, #tpu.memory_space<smem>>) -> (i32, i32) {
    %c0_i32 = arith.constant 0 : i32
    %c0_i32_0 = arith.constant 0 : i32
    return %arg0, %c0_i32 : i32, i32
  }
  func.func @transform_4(%arg0: i32, %arg1: memref<16xi32, #tpu.memory_space<smem>>) -> (i32, i32) {
    %c0_i32 = arith.constant 0 : i32
    %c0_i32_0 = arith.constant 0 : i32
    return %arg0, %c0_i32 : i32, i32
  }
}

</mosaic_0001>

<bundles_post_ra>
// kernel: tpu_custom_call.1
= control target key start
LH: loop header
LB: loop body
LE: loop exit
PB: predicated region body
PF: predicated region fallthrough
CT: control target
= control target key end

     0   :  { %s1420_s0 = inlined_call_operand.hbm [shape: s32[16], index: 0, kind: input, shape index: {}]   ;;  %s1421_s1 = inlined_call_operand.hbm [shape: f32[32,1,128], index: 1, kind: input, shape index: {}]   ;;  %s1422_s2 = inlined_call_operand.hbm [shape: f32[32,1,128], index: 2, kind: input, shape index: {}]   ;;  %s1423_s3 = inlined_call_operand.hbm [shape: f32[32,1,128], index: 3, kind: input, shape index: {}]   ;;  %s1424_s4 = inlined_call_operand.hbm [shape: f32[16,256], index: 4, kind: output, shape index: {0}]   ;;  %s1425_s5 = inlined_call_operand.hbm [shape: f32[16,128], index: 5, kind: output, shape index: {1}]  }
   0x1   :  { %s831_s20 = scalar_lea.hbm %s1420_s0, 16 }
   0x2   :  { %p832_p0 = scmp.ne.s32.totalorder %s1420_s0, %s831_s20  ;;  %p835_p1 = scmp.lt.u32.totalorder %s831_s20, %s1420_s0 }
   0x4   :  { %p837_p2 = pnand %p835_p1, %p832_p0 }
   0x6   :  { %840 = shalt.err (!%p837_p2)  }
   0x7   :  { %s1031_s25 = smov [#allocation3]  }
   0x8   :  { %12 = dma.hbm_to_smem %s1420_s0, 16, %s1031_s25, [#allocation2] }
   0x9   :  { %997 = dma.done.wait [#allocation2], 16 }
   0xa   :  { %998 = vsyncadd [#allocation2], 4294967280 }
   0xb   :  { %14 = sfence }
   0xc   :  { %15 = vsyncpa [#allocation5], 0 }
   0xd   :  { %16 = vsyncpa [#allocation8], 0 }
   0xe   :  { %17 = vsyncpa [#allocation6], 0 }
   0xf   :  { %19 = vsyncpa [#allocation6 + $0x1], 0 }
  0x10   :  { %20 = vsyncpa [#allocation12], 0 }
  0x11   :  { %22 = vsyncpa [#allocation12 + $0x1], 0  ;;  %s1081_s28 = smov 0   ;;  %s1083_s29 = smov 0  }
  0x12   :  { %s1085_s30 = smov 0   ;;  %s1087_s6 = smov 0  }
  0x13 LB: > { %s1102_s0 = sadd.s32 4294967295, %s1029_s6   ;;  %s656_s7 = sadd.s32 4294967294, %s1029_s6   ;;  %s1029_s6 = sphi %s1087_s6, %s1445_s6   ;;  %s1025_s30 = sphi %s1085_s30, %s1444_s30   ;;  %s1021_s29 = sphi %s1083_s29, %s1443_s29   ;;  %s1017_s28 = sphi %s1081_s28, %s1442_s28  }
  0x14   : > { %s1106_s8 = sadd.s32 1, %s1029_s6   ;;  %s98_s9 = sadd.s32 1, %s1025_s30 }
  0x15   : > { %s95_s10 = ssub.s32 %s1029_s6, %s1106_s8  ;;  %p108_p3 = scmp.ne.s32.totalorder %s1025_s30, %s1021_s29 }
  0x16   : > { %p96_p4 = scmp.eq.s32.totalorder %s95_s10, 0  ;;  %p109_p5 = scmp.eq.s32.totalorder %s1102_s0, 1 }
  0x17   : > { %p114_p6 = scmp.ne.s32.totalorder %s1021_s29, %s1017_s28  ;;  %p115_p7 = scmp.eq.s32.totalorder %s656_s7, 1 }
  0x18   : > { %s1117_s11 = scalar_select %p96_p4, %s1025_s30, %s98_s9  }
  0x19   : > { %p1119_p8 = por %p109_p5, %p108_p3  ;;  %p1123_p9 = por %p115_p7, %p114_p6 }
  0x1a   : > { %p657_p10 = scmp.ge.s32.totalorder %s1029_s6, 1  ;;  %p148_p11 = scmp.lt.s32.totalorder %s1029_s6, 3 }
  0x1b   : > { %s1429_s12 = scalar_select %p1119_p8, 1, 0 }
  0x1c   : > { %s1430_s13 = scalar_select %p1123_p9, 1, 0 }
  0x1d   : > { %p1426_p12 = scmp.eq.s32.totalorder %s1102_s0, 0  ;;  %p1130_p13 = pnand %p657_p10, %p148_p11 }
  0x1e   : > { %s1032_s15 = smov [#allocation7]   ;;  %s1033_s18 = smov [#allocation4]  }
  0x1f   : > { %s1431_s14 = scalar_select %p1130_p13, 1, 0 }
  0x20   : > { %p769_p0 = pneg %p1130_p13  ;;  %s173_s16 = sshll.u32 %s1032_s15, 4  ;;  %s1136_s16 = int_to_ptr.vmem [resolvable:$true] %s173_s16 }
  0x21   : > { %s160_s19 = sshll.u32 %s1033_s18, 4  ;;  %s1034_s20 = smov [#allocation9]   ;;  %s1144_s19 = int_to_ptr.vmem [resolvable:$true] %s160_s19 }
  0x22   : > { %p1140_p1 = pnand %p1426_p12, %p769_p0  ;;  %s1146_s21 = sshll.u32 %s1034_s20, 4  ;;  %s187_s21 = int_to_ptr.vmem [resolvable:$true] %s1146_s21 }
  0x23   : > { %s841_s24 = scalar_lea.hbm %s1422_s2, 512 }
  0x24   : > { %p842_p2 = scmp.ne.s32.totalorder %s1422_s2, %s841_s24  ;;  %p1156_p3 = pneg %p1140_p1 }
  0x25   : > { %p848_p6 = scmp.lt.u32.totalorder %s841_s24, %s1422_s2 }
  0x26   : > { %p844_p4 = pnand %p1156_p3, %p842_p2 }
  0x28   : > { %p845_p5 = pneg %p844_p4 }
  0x2a   : > { %p850_p7 = pnand %p848_p6, %p845_p5 }
  0x2c   : > { %853 = shalt.err (!%p850_p7)
}
  0x2d   : > { %s854_s10 = scalar_lea.vmem %s1136_s16, 512  ;;  %p862_p12 = scmp.lt.s32.totalorder %s1136_s16, %s1136_s16 }
  0x2e   : > { %p855_p10 = scmp.ne.s32.totalorder %s1136_s16, %s854_s10  ;;  %p863_p9 = scmp.lt.s32.totalorder %s854_s10, %s854_s10 }
  0x30   : > { %p857_p11 = pnand %p855_p10, %p1156_p3  ;;  %p864_p2 = por %p863_p9, %p862_p12 }
  0x32   : > { %p858_p0 = pneg %p857_p11 }
  0x34   : > { %p865_p4 = pnand %p864_p2, %p858_p0 }
  0x36   : > { %868 = shalt.err (!%p865_p4)
}
  0x37   : > { %s1035_s15 = smov 16   ;;  %s1036_s18 = smov 1  }
  0x38   : > { %775 = dma.hbm_to_vmem [thread:$0]  (!%p1140_p1), %s1422_s2, 512, %s1136_s16, [#allocation8], %s1035_s15, %s1035_s15, %s1036_s18  }
  0x39   : > { %s869_s25 = scalar_lea.hbm %s1421_s1, 512 }
  0x3a   : > { %p870_p9 = scmp.ne.s32.totalorder %s1421_s1, %s869_s25  ;;  %p876_p6 = scmp.lt.u32.totalorder %s869_s25, %s1421_s1 }
  0x3c   : > { %p872_p12 = pnand %p870_p9, %p1156_p3 }
  0x3e   : > { %p873_p5 = pneg %p872_p12 }
  0x40   : > { %p878_p7 = pnand %p876_p6, %p873_p5 }
  0x42   : > { %881 = shalt.err (!%p878_p7)
}
  0x43   : > { %s882_s16 = scalar_lea.vmem %s1144_s19, 512  ;;  %p890_p2 = scmp.lt.s32.totalorder %s1144_s19, %s1144_s19 }
  0x44   : > { %p883_p10 = scmp.ne.s32.totalorder %s1144_s19, %s882_s16  ;;  %p891_p4 = scmp.lt.s32.totalorder %s882_s16, %s882_s16 }
  0x46   : > { %p885_p11 = pnand %p883_p10, %p1156_p3  ;;  %p892_p9 = por %p891_p4, %p890_p2 }
  0x48   : > { %p886_p0 = pneg %p885_p11 }
  0x4a   : > { %p893_p12 = pnand %p892_p9, %p886_p0 }
  0x4c   : > { %896 = shalt.err (!%p893_p12)
}
  0x4d   : > { %772 = dma.hbm_to_vmem [thread:$0]  (!%p1140_p1), %s1421_s1, 512, %s1144_s19, [#allocation5], %s1035_s15, %s1035_s15, %s1036_s18  }
  0x4e   : > { %s897_s25 = scalar_lea.hbm %s1423_s3, 512 }
  0x4f   : > { %p898_p5 = scmp.ne.s32.totalorder %s1423_s3, %s897_s25  ;;  %p904_p10 = scmp.lt.u32.totalorder %s897_s25, %s1423_s3 }
  0x51   : > { %p900_p6 = pnand %p898_p5, %p1156_p3 }
  0x53   : > { %p901_p7 = pneg %p900_p6 }
  0x55   : > { %p906_p11 = pnand %p904_p10, %p901_p7 }
  0x57   : > { %909 = shalt.err (!%p906_p11)
}
  0x58   : > { %s910_s16 = scalar_lea.vmem %s187_s21, 512  ;;  %p918_p9 = scmp.lt.s32.totalorder %s187_s21, %s187_s21 }
  0x59   : > { %p911_p0 = scmp.ne.s32.totalorder %s187_s21, %s910_s16  ;;  %p919_p12 = scmp.lt.s32.totalorder %s910_s16, %s910_s16 }
  0x5b   : > { %p913_p2 = pnand %p911_p0, %p1156_p3  ;;  %p920_p8 = por %p919_p12, %p918_p9 }
  0x5d   : > { %p914_p4 = pneg %p913_p2 }
  0x5f   : > { %p921_p13 = pnand %p920_p8, %p914_p4 }
  0x61   : > { %924 = shalt.err (!%p921_p13)
}
  0x62   : > { %778 = dma.hbm_to_vmem [thread:$0]  (!%p1140_p1), %s1423_s3, 512, %s187_s21, [#allocation8], %s1035_s15, %s1035_s15, %s1036_s18  }
  0x63   : > { %p1434_p5 = scmp.ne.s32.totalorder %s1431_s14, 0 }
  0x64   : > { %p1435_p3 = scmp.eq.s32.totalorder (!%p1434_p5), %s1102_s0, 0 }
  0x65   : > { %202 = sbr.rel (%p1434_p5) target bundleno = 202 (0xca), region = 32 }
  0x6c   : > { %1000 = dma.done.wait (%p1435_p3), [#allocation5], 512   ;;  %p1436_p6 = pmov %p1435_p3 }
  0x6d   : > { %p1437_p8 = pmov %p1435_p3 }
  0x6e   : > { %1002 = vsyncadd (%p1436_p6), [#allocation5], 4294966784 }
  0x6f   : > { %1004 = dma.done.wait (%p1437_p8), [#allocation8], 1024   ;;  %p1438_p13 = pmov %p1435_p3 }
  0x70   : > { %s1239_s17 = sand.u32 1, %s1021_s29   ;;  %s667_s21 = sshll.u32 %s1102_s0, 3  ;;  %vm342_vm0 = vcmask 1040384   ;;  %vm344_vm1 = vcmask 1041408   ;;  %vm346_vm2 = vcmask 1042432   ;;  %vm348_vm3 = vcmask 1043456  }
  0x71   : > { %1006 = vsyncadd (%p1438_p13), [#allocation8], 4294966272  ;;  %s237_s27 = sld [smem:[#allocation3 + %s667_s21]]  ;;  %s238_s15 = sadd.s32 1, %s667_s21  ;;  %vm350_vm4 = vcmask 1044480   ;;  %vm352_vm5 = vcmask 1045504  }
  0x72   : > { %s239_s18 = sld [smem:[#allocation3 + %s238_s15]]  ;;  %s240_s22 = sadd.s32 2, %s667_s21  ;;  %vm354_vm6 = vcmask 1046528  }
  0x73   : > { %s241_s23 = sld [smem:[#allocation3 + %s240_s22]]  ;;  %s242_s24 = sadd.s32 3, %s667_s21 }
  0x74   : > { %s1243_s25 = sld [smem:[#allocation3 + %s242_s24]]  ;;  %s244_s26 = sadd.s32 4, %s667_s21 }
  0x75   : > { %s1245_s7 = sld [smem:[#allocation3 + %s244_s26]]  ;;  %s246_s9 = sadd.s32 5, %s667_s21 }
  0x76   : > { %s1247_s10 = sld [smem:[#allocation3 + %s246_s9]]  ;;  %s248_s16 = sadd.s32 6, %s667_s21 }
  0x77   : > { %s1249_s19 = sld [smem:[#allocation3 + %s248_s16]]  ;;  %s250_s20 = sadd.s32 7, %s667_s21 }
  0x78   : > { %s1251_s14 = sld [smem:[#allocation3 + %s250_s20]]  ;;  %p252_p1 = scmp.gt.s32.totalorder %s237_s27, 0 }
  0x79   : > { %p668_p7 = scmp.lt.s32.totalorder %s237_s27, 31  ;;  %p258_p10 = scmp.gt.s32.totalorder %s239_s18, 0 }
  0x7a   : > { %s1447_s27 = smov (!%p252_p1, %s237_s27), 0  ;;  %p673_p11 = scmp.lt.s32.totalorder %s239_s18, 31 }
  0x7b   : > { %s259_s15 = scalar_select %p258_p10, %s239_s18, 0 }
  0x7c   : > { %s1449_s27 = smov (!%p668_p7, %s1447_s27), 31  ;;  %p264_p0 = scmp.gt.s32.totalorder %s241_s23, 0 }
  0x7d   : > { %p678_p2 = scmp.lt.s32.totalorder %s241_s23, 31  ;;  %s1451_s15 = smov (!%p673_p11, %s259_s15), 31 }
  0x7e   : > { %s1453_s23 = smov (!%p264_p0, %s241_s23), 0  ;;  %p270_p4 = scmp.gt.s32.totalorder %s1243_s25, 0 }
  0x7f   : > { %s1455_s23 = smov (!%p678_p2, %s1453_s23), 31  ;;  %s256_s21 = scalar_lea.vmem [#allocation4], %s1449_s27 }
  0x80   : > { %v257_v0 = vld [vmem:[%s256_s21] sm:$0x1]  ;;  %s262_s22 = scalar_lea.vmem [#allocation4], %s1451_s15  ;;  %p683_p9 = scmp.lt.s32.totalorder %s1243_s25, 31 }
  0x81   : > { %v708_v1 = vld [vmem:[%s262_s22] ss:$0 sm:$0xff]  ;;  %s271_s24 = scalar_select %p270_p4, %s1243_s25, 0 }
  0x82   : > { %p276_p12 = scmp.gt.s32.totalorder %s1245_s7, 0  ;;  %p688_p5 = scmp.lt.s32.totalorder %s1245_s7, 31  ;;  %v343_v3 = vsel %vm342_vm0, %v257_v0, %v708_v1 }
  0x83   : > { %s268_s18 = scalar_lea.vmem [#allocation4], %s1455_s23  ;;  %s1457_s24 = smov (!%p683_p9, %s271_s24), 31 }
  0x84   : > { %v709_v2 = vld [vmem:[%s268_s18] ss:$0 sm:$0xff]  ;;  %s1459_s7 = smov (!%p276_p12, %s1245_s7), 0  ;;  %p282_p3 = scmp.gt.s32.totalorder %s1247_s10, 0 }
  0x85   : > { %s274_s26 = scalar_lea.vmem [#allocation4], %s1457_s24  ;;  %s1461_s7 = smov (!%p688_p5, %s1459_s7), 31  ;;  %v345_v5 = vsel %vm344_vm1, %v343_v3, %v709_v2 }
  0x86   : > { %v710_v4 = vld [vmem:[%s274_s26] ss:$0 sm:$0xff]  ;;  %s283_s25 = scalar_select %p282_p3, %s1247_s10, 0 }
  0x87   : > { %p693_p6 = scmp.lt.s32.totalorder %s1247_s10, 31  ;;  %s280_s9 = scalar_lea.vmem [#allocation4], %s1461_s7  ;;  %v347_v7 = vsel %vm346_vm2, %v345_v5, %v710_v4 }
  0x88   : > { %v711_v6 = vld [vmem:[%s280_s9] ss:$0 sm:$0xff]  ;;  %p288_p8 = scmp.gt.s32.totalorder %s1249_s19, 0  ;;  %p698_p13 = scmp.lt.s32.totalorder %s1249_s19, 31 }
  0x89   : > { %s1463_s25 = smov (!%p693_p6, %s283_s25), 31  ;;  %p294_p1 = scmp.gt.s32.totalorder %s1251_s14, 0  ;;  %v349_v8 = vsel %vm348_vm3, %v347_v7, %v711_v6 }
  0x8a   : > { %s1465_s19 = smov (!%p288_p8, %s1249_s19), 0  ;;  %s286_s16 = scalar_lea.vmem [#allocation4], %s1463_s25 }
  0x8b   : > { %v712_v9 = vld [vmem:[%s286_s16] ss:$0 sm:$0xff]  ;;  %s1467_s19 = smov (!%p698_p13, %s1465_s19), 31  ;;  %p703_p7 = scmp.lt.s32.totalorder %s1251_s14, 31 }
  0x8c   : > { %s295_s10 = scalar_select %p294_p1, %s1251_s14, 0  ;;  %v351_v10 = vsel %vm350_vm4, %v349_v8, %v712_v9 }
  0x8d   : > { %s292_s20 = scalar_lea.vmem [#allocation4], %s1467_s19  ;;  %s1439_s21 = sshll.u32 %s1239_s17, 4 }
  0x8e   : > { %v713_v11 = vld [vmem:[%s292_s20] ss:$0 sm:$0xff]  ;;  %s1296_s22 = scalar_lea.vmem [#allocation10], %s1439_s21  ;;  %s1469_s10 = smov (!%p703_p7, %s295_s10), 31 }
  0x8f   : > { %s509_s18 = sshll.u32 %s1296_s22, 4  ;;  %s357_s26 = scalar_lea.vmem [#allocation7], %s1449_s27  ;;  %v353_v13 = vsel %vm352_vm5, %v351_v10, %v713_v11  ;;  %s1303_s18 = int_to_ptr.vmem [resolvable:$true] %s509_s18 }
  0x90   : > { %v358_v12 = vld [vmem:[%s357_s26] sm:$0x1]  ;;  %s359_s14 = scalar_lea.vmem [#allocation7], %s1451_s15  ;;  %s298_s9 = scalar_lea.vmem [#allocation4], %s1469_s10 }
  0x91   : > { %v715_v14 = vld [vmem:[%s359_s14] ss:$0 sm:$0xff]  ;;  %s361_s16 = scalar_lea.vmem [#allocation7], %s1455_s23  ;;  %s363_s20 = scalar_lea.vmem [#allocation7], %s1457_s24 }
  0x92   : > { %v714_v15 = vld [vmem:[%s298_s9] ss:$0 sm:$0xff]  ;;  %v415_v17 = vsel %vm342_vm0, %v358_v12, %v715_v14  ;;  %s365_s21 = scalar_lea.vmem [#allocation7], %s1461_s7  ;;  %s367_s26 = scalar_lea.vmem [#allocation7], %s1463_s25 }
  0x93   : > { %v716_v16 = vld [vmem:[%s361_s16] ss:$0 sm:$0xff]  ;;  %v355_v18 = vsel %vm354_vm6, %v353_v13, %v714_v15  ;;  %s369_s14 = scalar_lea.vmem [#allocation7], %s1467_s19  ;;  %s666_s9 = sshll.u32 %s1239_s17, 3 }
  0x94   : > { %v717_v19 = vld [vmem:[%s363_s20] ss:$0 sm:$0xff]  ;;  %v416_v21 = vsel %vm344_vm1, %v415_v17, %v716_v16  ;;  %356 = vst [vmem:[%s1296_s22] sm:$0xff] %v355_v18  ;;  %s371_s16 = scalar_lea.vmem [#allocation7], %s1469_s10  ;;  %s423_s20 = scalar_lea.vmem [#allocation9], %s1449_s27 }
  0x95   : > { %v718_v20 = vld [vmem:[%s365_s21] ss:$0 sm:$0xff]  ;;  %v417_v24 = vsel %vm346_vm2, %v416_v21, %v717_v19  ;;  %s425_s21 = scalar_lea.vmem [#allocation9], %s1451_s15  ;;  %s433_s27 = scalar_lea.vmem [#allocation9], %s1463_s25 }
  0x96   : > { %v719_v22 = vld [vmem:[%s367_s26] ss:$0 sm:$0xff]  ;;  %v418_v26 = vsel %vm348_vm3, %v417_v24, %v718_v20  ;;  %s427_s26 = scalar_lea.vmem [#allocation9], %s1455_s23  ;;  %s1332_s23 = scalar_lea.vmem [#allocation11], %s666_s9 }
  0x97   : > { %v720_v23 = vld [vmem:[%s369_s14] ss:$0 sm:$0xff]  ;;  %v419_v27 = vsel %vm350_vm4, %v418_v26, %v719_v22  ;;  %s429_s14 = scalar_lea.vmem [#allocation9], %s1457_s24  ;;  %s522_s15 = sshll.u32 %s1332_s23, 4  ;;  %s1337_s15 = int_to_ptr.vmem [resolvable:$true] %s522_s15 }
  0x98   : > { %v721_v25 = vld [vmem:[%s371_s16] ss:$0 sm:$0xff]  ;;  %v420_v29 = vsel %vm352_vm5, %v419_v27, %v720_v23  ;;  %s431_s16 = scalar_lea.vmem [#allocation9], %s1461_s7  ;;  %s435_s24 = scalar_lea.vmem [#allocation9], %s1467_s19 }
  0x99   : > { %v424_v28 = vld [vmem:[%s423_s20] sm:$0x1]  ;;  %v421_v32 = vsel %vm354_vm6, %v420_v29, %v721_v25  ;;  %s437_s7 = scalar_lea.vmem [#allocation9], %s1469_s10  ;;  %s752_s25 = sshll.u32 %s1102_s0, 8 }
  0x9a   : > { %v722_v30 = vld [vmem:[%s425_s21] ss:$0 sm:$0xff]  ;;  %422 = vst [vmem:[%s1296_s22 + $0x8] sm:$0xff] %v421_v32  ;;  %s1346_s20 = scalar_lea.hbm %s1424_s4, %s752_s25  ;;  %s733_s21 = sshll.u32 %s1102_s0, 7 }
  0x9b   : > { %v723_v31 = vld [vmem:[%s427_s26] ss:$0 sm:$0xff]  ;;  %v481_v35 = vsel %vm342_vm0, %v424_v28, %v722_v30  ;;  %s490_s19 = scalar_lea.sflag [#allocation6], %s1239_s17  ;;  %s925_s26 = scalar_lea.vmem %s1303_s18, 256 }
  0x9c   : > { %v724_v33 = vld [vmem:[%s429_s14] ss:$0 sm:$0xff]  ;;  %v482_v37 = vsel %vm344_vm1, %v481_v35, %v723_v31  ;;  %p926_p10 = scmp.ne.s32.totalorder %s1303_s18, %s925_s26  ;;  %p1440_p11 = scmp.ne.s32.totalorder %s1429_s12, 0 }
  0x9d   : > { %v725_v34 = vld [vmem:[%s431_s16] ss:$0 sm:$0xff]  ;;  %v483_v39 = vsel %vm346_vm2, %v482_v37, %v724_v33  ;;  %s1037_s10 = smov [#allocation10]  }
  0x9e   : > { %v726_v36 = vld [vmem:[%s433_s27] ss:$0 sm:$0xff]  ;;  %v484_v41 = vsel %vm348_vm3, %v483_v39, %v725_v34  ;;  %p927_p0 = pnand %p926_p10, %p1440_p11  ;;  %s929_s14 = sshll.u32 %s1037_s10, 4  ;;  %s930_s14 = int_to_ptr.vmem [resolvable:$false] %s929_s14 }
  0x9f   : > { %v727_v38 = vld [vmem:[%s435_s24] ss:$0 sm:$0xff]  ;;  %v485_v42 = vsel %vm350_vm4, %v484_v41, %v726_v36  ;;  %s931_s16 = scalar_lea.vmem %s930_s14, 512  ;;  %p932_p4 = scmp.lt.s32.totalorder %s1303_s18, %s930_s14 }
  0xa0   : > { %v728_v40 = vld [vmem:[%s437_s7] ss:$0 sm:$0xff]  ;;  %v486_v43 = vsel %vm352_vm5, %v485_v42, %v727_v38  ;;  %p928_p2 = pneg %p927_p0  ;;  %p933_p9 = scmp.lt.s32.totalorder %s931_s16, %s925_s26 }
  0xa2   : > { %p934_p12 = por %p933_p9, %p932_p4 }
  0xa4   : > { %p935_p5 = pnand %p934_p12, %p928_p2 }
  0xa6   : > { %938 = shalt.err (!%p935_p5)
}
  0xa7   : > { %s939_s27 = scalar_lea.hbm %s1346_s20, 256  ;;  %s943_s25 = scalar_lea.hbm %s1424_s4, 512 }
  0xa8   : > { %p940_p3 = scmp.ne.s32.totalorder %s1346_s20, %s939_s27  ;;  %p944_p13 = scmp.lt.u32.totalorder %s1346_s20, %s1424_s4 }
  0xa9   : > { %p945_p1 = scmp.lt.u32.totalorder %s943_s25, %s939_s27  ;;  %p947_p10 = scmp.lt.u32.totalorder %s939_s27, %s1346_s20 }
  0xaa   : > { %p941_p6 = pnand %p940_p3, %p1440_p11 }
  0xab   : > { %p946_p7 = por %p945_p1, %p944_p13 }
  0xac   : > { %p942_p8 = pneg %p941_p6 }
  0xad   : > { %p948_p0 = por %p947_p10, %p946_p7 }
  0xaf   : > { %p949_p2 = pnand %p948_p0, %p942_p8 }
  0xb1   : > { %952 = shalt.err (!%p949_p2)
}
  0xb2   : > { %765 = dma.vmem_to_hbm [thread:$0]  (%p1440_p11), %s1303_s18, 256, %s1346_s20, %s490_s19   ;;  %v487_v44 = vsel %vm354_vm6, %v486_v43, %v728_v40 }
  0xb3   : > { %s1378_s14 = scalar_lea.hbm %s1425_s5, %s733_s21  ;;  %488 = vst [vmem:[%s1332_s23] sm:$0xff] %v487_v44  ;;  %s495_s16 = scalar_lea.sflag [#allocation12], %s1239_s17 }
  0xb4   : > { %s953_s27 = scalar_lea.vmem %s1337_s15, 128  ;;  %s1038_s24 = smov [#allocation11]  }
  0xb5   : > { %p954_p4 = scmp.ne.s32.totalorder %s1337_s15, %s953_s27  ;;  %s957_s7 = sshll.u32 %s1038_s24, 4  ;;  %s958_s7 = int_to_ptr.vmem [resolvable:$false] %s957_s7 }
  0xb6   : > { %s959_s25 = scalar_lea.vmem %s958_s7, 256  ;;  %p960_p5 = scmp.lt.s32.totalorder %s1337_s15, %s958_s7 }
  0xb7   : > { %p955_p9 = pnand %p954_p4, %p1440_p11  ;;  %p961_p3 = scmp.lt.s32.totalorder %s959_s25, %s953_s27 }
  0xb9   : > { %p956_p12 = pneg %p955_p9  ;;  %p962_p6 = por %p961_p3, %p960_p5 }
  0xbb   : > { %p963_p8 = pnand %p962_p6, %p956_p12 }
  0xbd   : > { %966 = shalt.err (!%p963_p8)
}
  0xbe   : > { %s967_s0 = scalar_lea.hbm %s1378_s14, 128  ;;  %s971_s23 = scalar_lea.hbm %s1425_s5, 256 }
  0xbf   : > { %p968_p13 = scmp.ne.s32.totalorder %s1378_s14, %s967_s0  ;;  %p972_p10 = scmp.lt.u32.totalorder %s1378_s14, %s1425_s5 }
  0xc0   : > { %p973_p0 = scmp.lt.u32.totalorder %s971_s23, %s967_s0  ;;  %p975_p4 = scmp.lt.u32.totalorder %s967_s0, %s1378_s14 }
  0xc1   : > { %p969_p1 = pnand %p968_p13, %p1440_p11 }
  0xc2   : > { %p974_p2 = por %p973_p0, %p972_p10 }
  0xc3   : > { %p970_p7 = pneg %p969_p1 }
  0xc4   : > { %p976_p9 = por %p975_p4, %p974_p2 }
  0xc6   : > { %p977_p12 = pnand %p976_p9, %p970_p7 }
  0xc8   : > { %980 = shalt.err (!%p977_p12)
}
  0xc9   : > { %766 = dma.vmem_to_hbm [thread:$0]  (%p1440_p11), %s1337_s15, 128, %s1378_s14, %s495_s16  }
  0xca PF: > { %p792_p5 = scmp.ge.s32.totalorder %s1029_s6, 2  ;;  %s534_s19 = sand.u32 1, %s1017_s28  }
  0xcb   : > { %p1441_p3 = scmp.ne.s32.totalorder %s1430_s13, 0  ;;  %s535_s22 = scalar_lea.sflag [#allocation6], %s534_s19 }
  0xcd   : > { %p780_p6 = pnand %p792_p5, %p1441_p3 }
  0xcf   : > { %1008 = dma.done.wait (!%p780_p6), %s535_s22, 256  }
  0xd0   : > { %1010 = vsyncadd (!%p780_p6), %s535_s22, 4294967040  ;;  %s544_s9 = scalar_lea.sflag [#allocation12], %s534_s19 }
  0xd1   : > { %1012 = dma.done.wait (!%p780_p6), %s544_s9, 128  }
  0xd2   : > { %1014 = vsyncadd (!%p780_p6), %s544_s9, 4294967168  ;;  %p25_p11 = scmp.ge.s32.totalorder %s1106_s8, 4   ;;  %s1442_s28 = smov %s1021_s29 }
  0xd3   : > { %s1443_s29 = smov %s1025_s30  ;;  %s1444_s30 = smov %s1117_s11 }
  0xd4   : > { %s1445_s6 = smov %s1106_s8  ;;  %27 = sbr.rel (!%p25_p11) target bundleno = 19 (0x13), region = 118 }
  0xdb   :  { %549 = vsyncpa [#allocation5], 1 }
  0xdc   :  { %551 = vsyncpa [#allocation5 + $0x1], 1 }
  0xdd   :  { %552 = vsyncpa [#allocation8], 1 }
  0xde   :  { %553 = vsyncpa [#allocation6], 1 }
  0xdf   :  { %555 = vsyncpa [#allocation6 + $0x1], 1 }
  0xe0   :  { %556 = vsyncpa [#allocation12], 1 }
  0xe1   :  { %558 = vsyncpa [#allocation12 + $0x1], 1 }

</bundles_post_ra>
